<compile_context>
chip_gen: v6e
topology: v6e:2x2x1
jax: 0.10.0
libtpu: 0.0.40
codegen_flags: <defaults>
</compile_context>

<pallas_src>
import functools

import jax
import jax.numpy as jnp
from jax.experimental import pallas as pl
from jax.experimental.pallas import tpu as pltpu

LANE = 128


def _round_up(x, m):
    return ((x + m - 1) // m) * m


def _cdiv(a, b):
    return (a + b - 1) // b


def _dqn_kernel(x_ref, w0_ref, w_ref, b_ref, out_ref, *, num_layers):
    """Fused MLP forward on one (TB, S) batch tile.

    x_ref  : (TB, S)       f32  raw states (S = state_dim, full last dim)
    w0_ref : (S, F)        bf16 first-layer weight (in_dim, out_dim), 0-padded
    w_ref  : (Lr, F, F)    bf16 remaining layers' weights, 0-padded (Lr>=1)
    b_ref  : (L, 1, F)     f32  all biases, 0-padded
    out_ref: (TB, F)       bf16 Q-values (padded columns are exactly zero)
    """
    h = x_ref[...].astype(jnp.bfloat16)  # cast on VPU, MXU operands in bf16
    acc = jnp.dot(h, w0_ref[...], preferred_element_type=jnp.float32) + b_ref[0]
    for l in range(1, num_layers):
        h = jnp.maximum(acc, 0.0).astype(jnp.bfloat16)
        acc = jnp.dot(h, w_ref[l - 1],
                      preferred_element_type=jnp.float32) + b_ref[l]
    out_ref[...] = acc.astype(out_ref.dtype)


def prepare_dqn_params(params):
    """One-time packing of per-layer params into the kernel's operand slabs.

    Call once (outside the training/inference step) and reuse the result;
    the forward path then only runs the pallas_call.

    params : list of (W, b), W shaped (in_dim, out_dim), b shaped (out_dim,)
    returns: (w0, w_rest, b_stack, action_dim)
    """
    num_layers = len(params)
    state_dim = params[0][0].shape[0]
    action_dim = params[-1][0].shape[1]

    # Hidden/output feature dims padded to a common lane-dense width F.
    # (The input dim stays at state_dim thanks to the separate w0 operand.)
    # TODO(synk): per-layer padded widths (256-multiples on v6e/v7x) once
    # hidden_dims become large/uneven; uniform F is exact at DQN-scale sizes.
    F = _round_up(max(w.shape[1] for w, _ in params), LANE)

    w0 = jnp.zeros((state_dim, F), jnp.bfloat16)
    w0 = w0.at[:, :params[0][0].shape[1]].set(params[0][0].astype(jnp.bfloat16))

    n_rest = max(num_layers - 1, 1)  # keep a (1,F,F) dummy slab if no hiddens
    w_rest = jnp.zeros((n_rest, F, F), jnp.bfloat16)
    b_stack = jnp.zeros((num_layers, 1, F), jnp.float32)
    b_stack = b_stack.at[0, 0, :params[0][1].shape[0]].set(
        params[0][1].astype(jnp.float32))
    for l in range(1, num_layers):
        w, b = params[l]
        di, do = w.shape
        w_rest = w_rest.at[l - 1, :di, :do].set(w.astype(jnp.bfloat16))
        b_stack = b_stack.at[l, 0, :do].set(b.astype(jnp.float32))
    return w0, w_rest, b_stack, action_dim


def _choose_tiling(B, batch_tile):
    # >=2 grid steps when the batch allows it, so v7x megacore uses both TCs
    # and DMA/compute overlap; TB ~ round_up(B/n, 8) keeps padding to <8 rows
    # per step instead of up to TB-1.
    n = max(_cdiv(B, batch_tile), 2 if B >= 16 else 1)
    TB = _round_up(_cdiv(B, n), 8)
    Bp = n * TB
    return TB, Bp, n


def dqn_forward(x, w0, w_rest, b_stack, *, action_dim, batch_tile=1024):
    """Fused DQN forward pass via pallas_call.

    x : (B, state_dim) float32 states.
    (w0, w_rest, b_stack) from prepare_dqn_params.
    returns: (B, action_dim) float32 Q-values.
    """
    B, S = x.shape
    num_layers = b_stack.shape[0]
    F = w0.shape[1]

    TB, Bp, n = _choose_tiling(B, batch_tile)
    x_p = x if Bp == B else jnp.zeros((Bp, S), x.dtype).at[:B].set(x)

    flops = 2 * Bp * (S * F + (num_layers - 1) * F * F)
    bytes_accessed = (Bp * S * 4 + w0.size * 2 + w_rest.size * 2
                      + b_stack.size * 4 + Bp * F * 2)

    out = pl.pallas_call(
        functools.partial(_dqn_kernel, num_layers=num_layers),
        out_shape=jax.ShapeDtypeStruct((Bp, F), jnp.bfloat16),
        grid=(n,),
        in_specs=[
            # Activations: tiled over the batch grid axis, narrow f32 DMA.
            pl.BlockSpec((TB, S), lambda i: (i, 0)),
            # Weights / biases: constant index_map -> VMEM-resident, one DMA.
            # (pipeline_mode=pl.Buffered(1) would halve their VMEM footprint;
            #  irrelevant at F=128, revisit for multi-K hidden dims on v7x.)
            pl.BlockSpec((S, F), lambda i: (0, 0)),
            pl.BlockSpec(w_rest.shape, lambda i: (0, 0, 0)),
            pl.BlockSpec(b_stack.shape, lambda i: (0, 0, 0)),
        ],
        out_specs=pl.BlockSpec((TB, F), lambda i: (i, 0)),
        compiler_params=pltpu.CompilerParams(
            dimension_semantics=("parallel",),
        ),
        cost_estimate=pl.CostEstimate(
            flops=flops, transcendentals=0, bytes_accessed=bytes_accessed),
    )(x_p, w0, w_rest, b_stack)

    # Tiny slice+cast; Q-values carry bf16 rounding (~1e-2 rel) vs the f32
    # PyTorch reference — acceptable for DQN action selection.
    return out[:B, :action_dim].astype(jnp.float32)


def init_dqn_params(key, state_dim, action_dim, hidden_dims):
    """PyTorch nn.Linear-style init (U(-1/sqrt(in), 1/sqrt(in))), weights stored
    as (in_dim, out_dim) so the kernel computes x @ W + b."""
    dims = [state_dim] + list(hidden_dims) + [action_dim]
    params = []
    for in_dim, out_dim in zip(dims[:-1], dims[1:]):
        key, kw, kb = jax.random.split(key, 3)
        bound = 1.0 / jnp.sqrt(jnp.float32(in_dim))
        w = jax.random.uniform(kw, (in_dim, out_dim), jnp.float32, -bound, bound)
        b = jax.random.uniform(kb, (out_dim,), jnp.float32, -bound, bound)
        params.append((w, b))
    return params


def dqn_reference(x, params):
    """Pure-JAX f32 reference for correctness checking."""
    h = x
    for l, (w, b) in enumerate(params):
        h = h @ w + b
        if l < len(params) - 1:
            h = jnp.maximum(h, 0.0)
    return h


if __name__ == "__main__":
    # Small shapes consistent with the module: DQN(state_dim=16, action_dim=8,
    # hidden_dims=[32, 32]) applied to a batch of 8 states.
    state_dim, action_dim = 16, 8
    hidden_dims = [32, 32]
    batch = 8

    key = jax.random.PRNGKey(0)
    key, kx = jax.random.split(key)
    x = jax.random.normal(kx, (batch, state_dim), jnp.float32)

    params = init_dqn_params(key, state_dim, action_dim, hidden_dims)

    # One-time packing (would be cached on the agent in real use).
    w0, w_rest, b_stack, adim = prepare_dqn_params(params)

    fwd = jax.jit(functools.partial(dqn_forward, action_dim=adim))
    q = fwd(x, w0, w_rest, b_stack)
    jax.block_until_ready(q)

    q_ref = dqn_reference(x, params)
    assert q.shape == (batch, action_dim)
    # bf16 matmul operands + bf16 output store (f32 accumulation) -> loosened
    # tolerance vs the f32 reference.
    assert jnp.allclose(q, q_ref, atol=5e-2, rtol=5e-2), "mismatch vs reference"

    print("KERNEL_OK")
</pallas_src>

<mosaic_0001>
module attributes {stable_mosaic.version = 11 : i64} {
  func.func @_dqn_kernel(%arg0: i32, %arg1: memref<8x16xf32, #tpu.memory_space<vmem>>, %arg2: memref<16x128xbf16, #tpu.memory_space<vmem>>, %arg3: memref<2x128x128xbf16, #tpu.memory_space<vmem>>, %arg4: memref<3x1x128xf32, #tpu.memory_space<vmem>>, %arg5: memref<8x128xbf16, #tpu.memory_space<vmem>>) attributes {dimension_semantics = [#tpu.dimension_semantics<parallel>], iteration_bounds = array<i64: 1>, scalar_prefetch = 0 : i64, scratch_operands = 0 : i64, tpu.core_type = #tpu.core_type<tc>, window_params = [{transform_indices = @transform_0, window_bounds = array<i64: 8, 16>}, {pipeline_mode = #tpu.pipeline_mode<synchronous>, transform_indices = @transform_1, window_bounds = array<i64: 16, 128>}, {pipeline_mode = #tpu.pipeline_mode<synchronous>, transform_indices = @transform_2, window_bounds = array<i64: 2, 128, 128>}, {pipeline_mode = #tpu.pipeline_mode<synchronous>, transform_indices = @transform_3, window_bounds = array<i64: 3, 1, 128>}, {transform_indices = @transform_4, window_bounds = array<i64: 8, 128>}]} {
    %c0 = arith.constant 0 : index
    %c0_0 = arith.constant 0 : index
    %0 = vector.load %arg1[%c0, %c0_0] : memref<8x16xf32, #tpu.memory_space<vmem>>, vector<8x16xf32>
    %1 = arith.truncf %0 : vector<8x16xf32> to vector<8x16xbf16>
    %c0_1 = arith.constant 0 : index
    %c0_2 = arith.constant 0 : index
    %2 = vector.load %arg2[%c0_1, %c0_2] : memref<16x128xbf16, #tpu.memory_space<vmem>>, vector<16x128xbf16>
    %cst = arith.constant dense<0.000000e+00> : vector<8x128xf32>
    %3 = tpu.matmul %1, %2, %cst {dimension_numbers = #tpu.dot_dimension_numbers<[1], [0], [0], [1], [0, 0, 1, 1], [], []>} : vector<8x16xbf16>, vector<16x128xbf16>, vector<8x128xf32> -> vector<8x128xf32>
    %c0_3 = arith.constant 0 : index
    %c0_4 = arith.constant 0 : index
    %c0_5 = arith.constant 0 : index
    %4 = vector.load %arg4[%c0_3, %c0_4, %c0_5] : memref<3x1x128xf32, #tpu.memory_space<vmem>>, vector<1x1x128xf32>
    %5 = vector.shape_cast %4 : vector<1x1x128xf32> to vector<1x128xf32>
    %6 = vector.broadcast %5 : vector<1x128xf32> to vector<8x128xf32>
    %7 = arith.addf %3, %6 : vector<8x128xf32>
    %cst_6 = arith.constant 0.000000e+00 : f32
    %8 = vector.broadcast %cst_6 : f32 to vector<8x128xf32>
    %9 = arith.maximumf %7, %8 : vector<8x128xf32>
    %10 = arith.truncf %9 : vector<8x128xf32> to vector<8x128xbf16>
    %c0_7 = arith.constant 0 : index
    %c0_8 = arith.constant 0 : index
    %c0_9 = arith.constant 0 : index
    %11 = vector.load %arg3[%c0_7, %c0_8, %c0_9] : memref<2x128x128xbf16, #tpu.memory_space<vmem>>, vector<1x128x128xbf16>
    %12 = vector.shape_cast %11 : vector<1x128x128xbf16> to vector<128x128xbf16>
    %cst_10 = arith.constant dense<0.000000e+00> : vector<8x128xf32>
    %13 = tpu.matmul %10, %12, %cst_10 {dimension_numbers = #tpu.dot_dimension_numbers<[1], [0], [0], [1], [0, 0, 1, 1], [], []>} : vector<8x128xbf16>, vector<128x128xbf16>, vector<8x128xf32> -> vector<8x128xf32>
    %c1 = arith.constant 1 : index
    %c0_11 = arith.constant 0 : index
    %c0_12 = arith.constant 0 : index
    %14 = vector.load %arg4[%c1, %c0_11, %c0_12] : memref<3x1x128xf32, #tpu.memory_space<vmem>>, vector<1x1x128xf32>
    %15 = vector.shape_cast %14 : vector<1x1x128xf32> to vector<1x128xf32>
    %16 = vector.broadcast %15 : vector<1x128xf32> to vector<8x128xf32>
    %17 = arith.addf %13, %16 : vector<8x128xf32>
    %cst_13 = arith.constant 0.000000e+00 : f32
    %18 = vector.broadcast %cst_13 : f32 to vector<8x128xf32>
    %19 = arith.maximumf %17, %18 : vector<8x128xf32>
    %20 = arith.truncf %19 : vector<8x128xf32> to vector<8x128xbf16>
    %c1_14 = arith.constant 1 : index
    %c0_15 = arith.constant 0 : index
    %c0_16 = arith.constant 0 : index
    %21 = vector.load %arg3[%c1_14, %c0_15, %c0_16] : memref<2x128x128xbf16, #tpu.memory_space<vmem>>, vector<1x128x128xbf16>
    %22 = vector.shape_cast %21 : vector<1x128x128xbf16> to vector<128x128xbf16>
    %cst_17 = arith.constant dense<0.000000e+00> : vector<8x128xf32>
    %23 = tpu.matmul %20, %22, %cst_17 {dimension_numbers = #tpu.dot_dimension_numbers<[1], [0], [0], [1], [0, 0, 1, 1], [], []>} : vector<8x128xbf16>, vector<128x128xbf16>, vector<8x128xf32> -> vector<8x128xf32>
    %c2 = arith.constant 2 : index
    %c0_18 = arith.constant 0 : index
    %c0_19 = arith.constant 0 : index
    %24 = vector.load %arg4[%c2, %c0_18, %c0_19] : memref<3x1x128xf32, #tpu.memory_space<vmem>>, vector<1x1x128xf32>
    %25 = vector.shape_cast %24 : vector<1x1x128xf32> to vector<1x128xf32>
    %26 = vector.broadcast %25 : vector<1x128xf32> to vector<8x128xf32>
    %27 = arith.addf %23, %26 : vector<8x128xf32>
    %28 = arith.truncf %27 : vector<8x128xf32> to vector<8x128xbf16>
    %c0_20 = arith.constant 0 : index
    %c0_21 = arith.constant 0 : index
    %29 = vector.load %arg5[%c0_20, %c0_21] : memref<8x128xbf16, #tpu.memory_space<vmem>>, vector<8x128xbf16>
    tpu.vector_store %arg5[%c0_20, %c0_21], %28 {strides = array<i32>} : memref<8x128xbf16, #tpu.memory_space<vmem>>, vector<8x128xbf16>,
    return
  }
  func.func @transform_0(%arg0: i32) -> (i32, i32) {
    %c0_i32 = arith.constant 0 : i32
    %c0_i32_0 = arith.constant 0 : i32
    return %arg0, %c0_i32 : i32, i32
  }
  func.func @transform_1(%arg0: i32) -> (i32, i32) {
    %c0_i32 = arith.constant 0 : i32
    %c0_i32_0 = arith.constant 0 : i32
    %c0_i32_1 = arith.constant 0 : i32
    return %c0_i32, %c0_i32_0 : i32, i32
  }
  func.func @transform_2(%arg0: i32) -> (i32, i32, i32) {
    %c0_i32 = arith.constant 0 : i32
    %c0_i32_0 = arith.constant 0 : i32
    %c0_i32_1 = arith.constant 0 : i32
    %c0_i32_2 = arith.constant 0 : i32
    return %c0_i32, %c0_i32_0, %c0_i32_1 : i32, i32, i32
  }
  func.func @transform_3(%arg0: i32) -> (i32, i32, i32) {
    %c0_i32 = arith.constant 0 : i32
    %c0_i32_0 = arith.constant 0 : i32
    %c0_i32_1 = arith.constant 0 : i32
    %c0_i32_2 = arith.constant 0 : i32
    return %c0_i32, %c0_i32_0, %c0_i32_1 : i32, i32, i32
  }
  func.func @transform_4(%arg0: i32) -> (i32, i32) {
    %c0_i32 = arith.constant 0 : i32
    %c0_i32_0 = arith.constant 0 : i32
    return %arg0, %c0_i32 : i32, i32
  }
}

</mosaic_0001>

<bundles_post_ra>
// kernel: dqn_forward.1
= control target key start
LH: loop header
LB: loop body
LE: loop exit
PB: predicated region body
PF: predicated region fallthrough
CT: control target
= control target key end

     0   :  { %9 = vsyncpa [#allocation3], 0  ;;  %s605_s0 = inlined_call_operand.hbm [shape: f32[8,16], index: 0, kind: input, shape index: {}]   ;;  %s606_s1 = inlined_call_operand.hbm [shape: bf16[16,128], index: 1, kind: input, shape index: {}]   ;;  %s607_s2 = inlined_call_operand.hbm [shape: bf16[2,128,128], index: 2, kind: input, shape index: {}]   ;;  %s608_s3 = inlined_call_operand.vmem [shape: f32[3,1,128], index: 3, kind: input, shape index: {}]   ;;  %s609_s4 = inlined_call_operand.vmem [shape: bf16[8,128], index: 4, kind: output, shape index: {}]  }
   0x1   :  { %10 = vsyncpa [#allocation5], 0  ;;  %s532_s15 = smov [#allocation4]  }
   0x2   :  { %s26_s16 = sshll.u32 %s532_s15, 4  ;;  %s27_s16 = int_to_ptr.vmem [resolvable:$true] %s26_s16 }
   0x3   :  { %s476_s17 = scalar_lea.vmem %s27_s16, 128  ;;  %p481_p1 = scmp.lt.s32.totalorder %s27_s16, %s27_s16 }
   0x4   :  { %p477_p0 = scmp.ne.s32.totalorder %s27_s16, %s476_s17  ;;  %p482_p2 = scmp.lt.s32.totalorder %s476_s17, %s476_s17 }
   0x6   :  { %p483_p3 = por %p482_p2, %p481_p1 }
   0x8   :  { %p484_p4 = pnand %p483_p3, %p477_p0 }
   0xa   :  { %487 = shalt.err (!%p484_p4)
}
   0xb   :  { %s533_s18 = smov 64   ;;  %s534_s19 = smov 4  }
   0xc   :  { %32 = dma.hbm_to_vmem [thread:$0]  %s606_s1, 128, %s27_s16, [#allocation5], %s533_s18, %s533_s18, %s534_s19  }
   0xd   :  { %s535_s22 = smov [#allocation2]   ;;  %s536_s24 = smov [#allocation6]  }
   0xe   :  { %s17_s23 = sshll.u32 %s535_s22, 4  ;;  %s38_s25 = sshll.u32 %s536_s24, 4  ;;  %s18_s23 = int_to_ptr.vmem [resolvable:$true] %s17_s23  ;;  %s39_s25 = int_to_ptr.vmem [resolvable:$true] %s38_s25 }
   0xf   :  { %s496_s26 = scalar_lea.vmem %s18_s23, 128  ;;  %p501_p6 = scmp.lt.s32.totalorder %s18_s23, %s18_s23 }
  0x10   :  { %p497_p5 = scmp.ne.s32.totalorder %s18_s23, %s496_s26  ;;  %p502_p7 = scmp.lt.s32.totalorder %s496_s26, %s496_s26 }
  0x12   :  { %p503_p8 = por %p502_p7, %p501_p6 }
  0x14   :  { %p504_p9 = pnand %p503_p8, %p497_p5 }
  0x16   :  { %507 = shalt.err (!%p504_p9)
}
  0x17   :  { %20 = dma.hbm_to_vmem [thread:$0]  %s605_s0, 128, %s18_s23, [#allocation3]  }
  0x18   :  { %s516_s29 = scalar_lea.vmem %s39_s25, 2048  ;;  %p521_p11 = scmp.lt.s32.totalorder %s39_s25, %s39_s25 }
  0x19   :  { %p517_p10 = scmp.ne.s32.totalorder %s39_s25, %s516_s29  ;;  %p522_p12 = scmp.lt.s32.totalorder %s516_s29, %s516_s29 }
  0x1b   :  { %p523_p13 = por %p522_p12, %p521_p11 }
  0x1d   :  { %p524_p0 = pnand %p523_p13, %p517_p10 }
  0x1f   :  { %527 = shalt.err (!%p524_p0)
}
  0x20   :  { %44 = dma.hbm_to_vmem [thread:$0]  %s607_s2, 2048, %s39_s25, [#allocation5], %s533_s18, %s533_s18, %s534_s19  }
  0x21   :  { %528 = dma.done.wait [#allocation3], 128  }
  0x22   :  { %529 = vsyncadd [#allocation3], 4294967168 }
  0x23   :  { %530 = dma.done.wait [#allocation5], 2176  }
  0x24   :  { %531 = vsyncadd [#allocation5], 4294965120  ;;  %v537_v0 = vmov 0.0   ;;  %vm538_vm0 = vmmov 0   ;;  %v451_v1 = vld [vmem:[#allocation4] sm:$0xff]   ;;  %v57_v2 = vld [vmem:[#allocation2] sm:$0xff] }
  0x25   :  { %398 = vmatprep.subr.bf16.mxu0 %v537_v0  ;;  %400 = vmatprep.mubr.msk.bf16.mxu0 %vm538_vm0, %v537_v0  ;;  %v58_v3 = vpack.c.bf16 %v57_v2, %v57_v2  ;;  %vm74_vm1 = vcmask 130048   ;;  %v452_v4 = vld [vmem:[#allocation6 + $0x38] sm:$0xff]   ;;  %v453_v5 = vld [vmem:[#allocation6 + $0x30] sm:$0xff]   ;;  %v454_v6 = vld [vmem:[#allocation6 + $0x28] sm:$0xff]  }
  0x26   :  { %404 = vmatprep.subr.bf16.mxu1 %v537_v0  ;;  %420 = vmatprep.mubr.msk.bf16.mxu1 %vm538_vm0, %v537_v0  ;;  %v455_v7 = vld [vmem:[#allocation6 + $0x20] sm:$0xff]   ;;  %v456_v8 = vld [vmem:[#allocation6 + $0x18] sm:$0xff]   ;;  %v457_v9 = vld [vmem:[#allocation6 + $0x10] sm:$0xff]  }
  0x27   :  { %399 = vmatpush3.bf16.msra.mxu0 %v451_v1  ;;  %405 = vmatpush3.bf16.msra.mxu1 %v452_v4  ;;  %v458_v10 = vld [vmem:[#allocation6 + $0x8] sm:$0xff]   ;;  %v459_v11 = vld [vmem:[#allocation6] sm:$0xff]   ;;  %v460_v12 = vld [vmem:[#allocation6 + $0x78] sm:$0xff]  }
  0x28   :  { %424 = vmatprep.subr.bf16.mxu0 %v537_v0  ;;  %406 = vmatprep.subr.bf16.mxu1 %v537_v0  ;;  %v461_v13 = vld [vmem:[#allocation6 + $0x70] sm:$0xff]   ;;  %v462_v14 = vld [vmem:[#allocation6 + $0x68] sm:$0xff]   ;;  %v463_v15 = vld [vmem:[#allocation6 + $0x60] sm:$0xff]  }
  0x29   :  { %v464_v16 = vld [vmem:[#allocation6 + $0x58] sm:$0xff]   ;;  %v465_v17 = vld [vmem:[#allocation6 + $0x50] sm:$0xff]   ;;  %v466_v26 = vld [vmem:[#allocation6 + $0x48] sm:$0xff]  }
  0x2a   :  { %401 = vmatmul.mubr.msk.bf16.vlgmr.msra.gmra.mxu0 %vm74_vm1, %v58_v3  ;;  %v355_v18 = vld [vmem:[%s608_s3] ss:$0 sm:$0xff]  ;;  %v467_v27 = vld [vmem:[#allocation6 + $0x40] sm:$0xff]   ;;  %v359_v28 = vld [vmem:[%s608_s3 + $0x1] ss:$0 sm:$0xff] }
  0x2b   :  { %440 = vmatprep.mubr.msk.bf16.mxu0 %vm538_vm0, %v537_v0  ;;  %407 = vmatpush3.bf16.msra.mxu1 %v453_v5  ;;  %v369_v36 = vld [vmem:[%s608_s3 + $0x2] ss:$0 sm:$0xff] }
  0x2c   :  { %408 = vmatprep.subr.bf16.mxu1 %v537_v0  ;;  %425 = vmatpush3.bf16.msra.mxu0 %v460_v12 }
  0x2d   :  { %426 = vmatprep.subr.bf16.mxu0 %v537_v0 }
  0x2f   :  { %409 = vmatpush3.bf16.msra.mxu1 %v454_v6 }
  0x30   :  { %410 = vmatprep.subr.bf16.mxu1 %v537_v0  ;;  %427 = vmatpush3.bf16.msra.mxu0 %v461_v13 }
  0x31   :  { %428 = vmatprep.subr.bf16.mxu0 %v537_v0 }
  0x33   :  { %411 = vmatpush3.bf16.msra.mxu1 %v455_v7 }
  0x34   :  { %412 = vmatprep.subr.bf16.mxu1 %v537_v0  ;;  %429 = vmatpush3.bf16.msra.mxu0 %v462_v14 }
  0x35   :  { %430 = vmatprep.subr.bf16.mxu0 %v537_v0 }
  0x37   :  { %413 = vmatpush3.bf16.msra.mxu1 %v456_v8 }
  0x38   :  { %414 = vmatprep.subr.bf16.mxu1 %v537_v0  ;;  %431 = vmatpush3.bf16.msra.mxu0 %v463_v15 }
  0x39   :  { %432 = vmatprep.subr.bf16.mxu0 %v537_v0 }
  0x3b   :  { %415 = vmatpush3.bf16.msra.mxu1 %v457_v9 }
  0x3c   :  { %416 = vmatprep.subr.bf16.mxu1 %v537_v0  ;;  %433 = vmatpush3.bf16.msra.mxu0 %v464_v16 }
  0x3d   :  { %434 = vmatprep.subr.bf16.mxu0 %v537_v0 }
  0x3f   :  { %417 = vmatpush3.bf16.msra.mxu1 %v458_v10 }
  0x40   :  { %418 = vmatprep.subr.bf16.mxu1 %v537_v0  ;;  %435 = vmatpush3.bf16.msra.mxu0 %v465_v17 }
  0x41   :  { %436 = vmatprep.subr.bf16.mxu0 %v537_v0 }
  0x43   :  { %419 = vmatpush3.bf16.msra.mxu1 %v459_v11 }
  0x44   :  { %437 = vmatpush3.bf16.msra.mxu0 %v466_v26 }
  0x45   :  { %438 = vmatprep.subr.bf16.mxu0 %v537_v0 }
  0x48   :  { %439 = vmatpush3.bf16.msra.mxu0 %v467_v27 }
  0xea   :  { %v112_v19 = vpop.f32.mrf.mxu0 }
  0xeb   :  { %v113_v20 = vadd.f32 %v355_v18, %v112_v19 }
  0xec   :  { %v402_v21 = vpop.f32.mrf.mxu0 }
  0xed   :  { %v118_v22 = vmax.f32 %v113_v20, 0.0 }
  0xee   :  { %v115_v23 = vpop.f32.mrf.mxu0 }
  0xef   :  { %v119_v24 = vpack.c.bf16 %v118_v22, %v118_v22 }
  0xf0   :  { %v403_v25 = vpop.f32.mrf.mxu0 }
  0xf1   :  { %421 = vmatmul.mubr.bf16.vlgmr.msra.gmra.mxu1 %v119_v24 }
 0x1b1   :  { %v226_v29 = vpop.f32.mrf.mxu1 }
 0x1b2   :  { %v227_v30 = vadd.f32 %v359_v28, %v226_v29 }
 0x1b3   :  { %v422_v31 = vpop.f32.mrf.mxu1 }
 0x1b4   :  { %v232_v32 = vmax.f32 %v227_v30, 0.0 }
 0x1b5   :  { %v229_v33 = vpop.f32.mrf.mxu1 }
 0x1b6   :  { %v233_v34 = vpack.c.bf16 %v232_v32, %v232_v32 }
 0x1b7   :  { %v423_v35 = vpop.f32.mrf.mxu1 }
 0x1b8   :  { %441 = vmatmul.mubr.bf16.vlgmr.msra.gmra.mxu0 %v233_v34 }
 0x278   :  { %v341_v37 = vpop.f32.mrf.mxu0 }
 0x279   :  { %v342_v38 = vadd.f32 %v369_v36, %v341_v37 }
 0x27a   :  { %v442_v39 = vpop.f32.mrf.mxu0 }
 0x27b   :  { %v347_v40 = vpack.c.bf16 %v342_v38, %v342_v38 }
 0x27c   :  { %v344_v41 = vpop.f32.mrf.mxu0 }
 0x27d   :  { %348 = vst [vmem:[%s609_s4] sm:$0xf] %v347_v40 }
 0x27e   :  { %v443_v42 = vpop.f32.mrf.mxu0 }
 0x27f   :  { %353 = vsyncpa [#allocation3], 1 }
 0x280   :  { %354 = vsyncpa [#allocation5], 1 }

</bundles_post_ra>
